<compile_context>
chip_gen: v7x
topology: tpu7x:2x2x1
jax: 0.10.0
libtpu: 0.0.40
codegen_flags: <defaults>
</compile_context>

<pallas_src>
import functools

import jax
import jax.numpy as jnp
from jax.experimental import pallas as pl
from jax.experimental.pallas import tpu as pltpu


def _round_up(x, m):
    return (x + m - 1) // m * m


def _fold_norms(adj):
    """A_hat[v, u] = in_deg(v)^-0.5 * adj[v, u] * out_deg(u)^-0.5 (degrees clamped at 1)."""
    adj = adj.astype(jnp.float32)
    out_deg = jnp.clip(jnp.sum(adj, axis=0), 1.0)   # out_degree(u) = column sum
    in_deg = jnp.clip(jnp.sum(adj, axis=1), 1.0)    # in_degree(v)  = row sum
    src_norm = out_deg ** -0.5                      # [N]
    dst_norm = in_deg ** -0.5                       # [N]
    return dst_norm[:, None] * adj * src_norm[None, :]


def _grec_kernel(a_ref, feat_ref, out_ref, *, alpha):
    """One propagation layer per grid step.

    The f32 state is carried in the output block itself: its block index is
    constant over the layer axis, so it stays VMEM-resident and is written
    back to HBM only once at the end of the grid.
    """
    l = pl.program_id(0)

    @pl.when(l == 0)
    def _():
        out_ref[...] = feat_ref[...].astype(jnp.float32)

    cur = out_ref[...]                                        # f32 carried state
    # MXU matmul at bf16 input rate, f32 accumulation.
    agg = jnp.dot(a_ref[...], cur.astype(jnp.bfloat16),
                  preferred_element_type=jnp.float32)
    out_ref[...] = (1.0 - alpha) * agg + alpha * cur


def grec_conv(adj, feat, *, layer, alpha):
    """adj: [N, N] dense adjacency (adj[v, u] = 1. if edge u->v), feat: [N, D]."""
    N, D = feat.shape
    assert adj.shape == (N, N)
    if layer == 0:
        return feat

    # Fold the symmetric normalization into the adjacency once (wrapper-side).
    a_hat = _fold_norms(adj)

    # Pad to lane/sublane/MXU-friendly sizes: lane-dense D, 128-aligned N.
    n_pad = _round_up(N, 128)
    d_pad = _round_up(D, 128)
    a_hat = jnp.pad(a_hat, ((0, n_pad - N), (0, n_pad - N))).astype(jnp.bfloat16)
    feat_p = jnp.pad(feat.astype(jnp.float32), ((0, n_pad - N), (0, d_pad - D)))

    kernel = functools.partial(_grec_kernel, alpha=float(alpha))

    vmem_bytes = (2 * n_pad * n_pad * 2          # bf16 A_hat (pipeline-buffered)
                  + 2 * n_pad * d_pad * 4        # f32 input feat
                  + 2 * n_pad * d_pad * 4        # f32 output / carried state
                  + (4 << 20))                   # slack
    vmem_bytes = int(min(vmem_bytes, 100 << 20))

    out = pl.pallas_call(
        kernel,
        out_shape=jax.ShapeDtypeStruct((n_pad, d_pad), jnp.float32),
        grid_spec=pltpu.PrefetchScalarGridSpec(
            num_scalar_prefetch=0,
            grid=(layer,),
            in_specs=[
                # Constant index maps: blocks are DMA'd once and stay resident.
                pl.BlockSpec((n_pad, n_pad), lambda l: (0, 0)),  # A_hat (bf16)
                pl.BlockSpec((n_pad, d_pad), lambda l: (0, 0)),  # input feat (read at l==0)
            ],
            out_specs=pl.BlockSpec((n_pad, d_pad), lambda l: (0, 0)),
        ),
        compiler_params=pltpu.CompilerParams(
            dimension_semantics=("arbitrary",),   # layer loop is a sequential carry
            vmem_limit_bytes=vmem_bytes,
        ),
        cost_estimate=pl.CostEstimate(
            flops=2 * layer * n_pad * n_pad * d_pad,
            transcendentals=0,
            bytes_accessed=n_pad * n_pad * 2 + 2 * n_pad * d_pad * 4,
        ),
    )(a_hat, feat_p)

    return out[:N, :D].astype(feat.dtype)


def grec_conv_ref(adj, feat, *, layer, alpha):
    """Pure-JAX f32 reference mirroring the PyTorch forward."""
    adj = adj.astype(jnp.float32)
    out_deg = jnp.clip(jnp.sum(adj, axis=0), 1.0)
    in_deg = jnp.clip(jnp.sum(adj, axis=1), 1.0)
    src_norm = (out_deg ** -0.5).reshape(-1, 1)
    dst_norm = (in_deg ** -0.5).reshape(-1, 1)
    last_feat = feat
    for _ in range(layer):
        h = feat * src_norm
        h = adj @ h
        h = h * dst_norm
        feat = (1.0 - alpha) * h + alpha * last_feat
        last_feat = feat
    return feat


def grec_conv_ref_mixed(adj, feat, *, layer, alpha):
    """Reference emulating the kernel's bf16 matmul inputs / f32 accumulation."""
    a_hat = _fold_norms(adj).astype(jnp.bfloat16).astype(jnp.float32)
    h = feat.astype(jnp.float32)
    for _ in range(layer):
        agg = a_hat @ h.astype(jnp.bfloat16).astype(jnp.float32)
        h = (1.0 - alpha) * agg + alpha * h
    return h


if __name__ == "__main__":
    # Small deterministic example: N=64 nodes, D=32 features, 3 layers, alpha=0.1
    N, D = 64, 32
    LAYER, ALPHA = 3, 0.1

    key = jax.random.PRNGKey(0)
    k_adj, k_feat = jax.random.split(key)

    # Deterministic random directed graph (dense 0/1 adjacency, ~10% density).
    adj = (jax.random.uniform(k_adj, (N, N)) < 0.1).astype(jnp.float32)
    feat = jax.random.normal(k_feat, (N, D), dtype=jnp.float32)

    out = grec_conv(adj, feat, layer=LAYER, alpha=ALPHA)
    out = jax.block_until_ready(out)
    assert out.shape == (N, D)

    # Tight check vs. a reference that emulates the kernel's bf16 matmul inputs.
    ref_mixed = grec_conv_ref_mixed(adj, feat, layer=LAYER, alpha=ALPHA)
    err_mixed = float(jnp.max(jnp.abs(out - ref_mixed)))
    assert err_mixed < 2e-2, f"mismatch vs mixed-precision reference: {err_mixed}"

    # Loose semantic check vs. the full-f32 reference (bf16 A_hat rounds coefficients).
    ref_f32 = grec_conv_ref(adj, feat, layer=LAYER, alpha=ALPHA)
    err_f32 = float(jnp.max(jnp.abs(out - ref_f32)))
    scale = float(jnp.maximum(1.0, jnp.max(jnp.abs(ref_f32))))
    assert err_f32 < 1e-1 * scale, f"mismatch vs f32 reference: {err_f32}"

    print("KERNEL_OK")
</pallas_src>

<mosaic_0001>
module attributes {stable_mosaic.version = 11 : i64} {
  func.func @_grec_kernel(%arg0: i32, %arg1: memref<128x128xbf16, #tpu.memory_space<vmem>>, %arg2: memref<128x128xf32, #tpu.memory_space<vmem>>, %arg3: memref<128x128xf32, #tpu.memory_space<vmem>>) attributes {dimension_semantics = [#tpu.dimension_semantics<arbitrary>], iteration_bounds = array<i64: 3>, scalar_prefetch = 0 : i64, scratch_operands = 0 : i64, tpu.core_type = #tpu.core_type<tc>, window_params = [{pipeline_mode = #tpu.pipeline_mode<synchronous>, transform_indices = @transform_0, window_bounds = array<i64: 128, 128>}, {pipeline_mode = #tpu.pipeline_mode<synchronous>, transform_indices = @transform_1, window_bounds = array<i64: 128, 128>}, {pipeline_mode = #tpu.pipeline_mode<synchronous>, transform_indices = @transform_2, window_bounds = array<i64: 128, 128>}]} {
    %c0_i32 = arith.constant 0 : i32
    %0 = arith.cmpi eq, %arg0, %c0_i32 : i32
    %1 = arith.extui %0 : i1 to i32
    %c0_i32_0 = arith.constant 0 : i32
    %2 = arith.cmpi ne, %1, %c0_i32_0 : i32
    scf.if %2 {
      %c0_8 = arith.constant 0 : index
      %c0_9 = arith.constant 0 : index
      %13 = vector.load %arg2[%c0_8, %c0_9] : memref<128x128xf32, #tpu.memory_space<vmem>>, vector<128x128xf32>
      %c0_10 = arith.constant 0 : index
      %c0_11 = arith.constant 0 : index
      %14 = vector.load %arg3[%c0_10, %c0_11] : memref<128x128xf32, #tpu.memory_space<vmem>>, vector<128x128xf32>
      tpu.vector_store %arg3[%c0_10, %c0_11], %13 {strides = array<i32>} : memref<128x128xf32, #tpu.memory_space<vmem>>, vector<128x128xf32>,
    } else {
    }
    %c0 = arith.constant 0 : index
    %c0_1 = arith.constant 0 : index
    %3 = vector.load %arg3[%c0, %c0_1] : memref<128x128xf32, #tpu.memory_space<vmem>>, vector<128x128xf32>
    %c0_2 = arith.constant 0 : index
    %c0_3 = arith.constant 0 : index
    %4 = vector.load %arg1[%c0_2, %c0_3] : memref<128x128xbf16, #tpu.memory_space<vmem>>, vector<128x128xbf16>
    %5 = arith.truncf %3 : vector<128x128xf32> to vector<128x128xbf16>
    %cst = arith.constant dense<0.000000e+00> : vector<128x128xf32>
    %6 = tpu.matmul %4, %5, %cst {dimension_numbers = #tpu.dot_dimension_numbers<[1], [0], [0], [1], [0, 0, 1, 1], [], []>} : vector<128x128xbf16>, vector<128x128xbf16>, vector<128x128xf32> -> vector<128x128xf32>
    %cst_4 = arith.constant 0.899999976 : f32
    %7 = vector.broadcast %cst_4 : f32 to vector<128x128xf32>
    %8 = arith.mulf %7, %6 : vector<128x128xf32>
    %cst_5 = arith.constant 1.000000e-01 : f32
    %9 = vector.broadcast %cst_5 : f32 to vector<128x128xf32>
    %10 = arith.mulf %9, %3 : vector<128x128xf32>
    %11 = arith.addf %8, %10 : vector<128x128xf32>
    %c0_6 = arith.constant 0 : index
    %c0_7 = arith.constant 0 : index
    %12 = vector.load %arg3[%c0_6, %c0_7] : memref<128x128xf32, #tpu.memory_space<vmem>>, vector<128x128xf32>
    tpu.vector_store %arg3[%c0_6, %c0_7], %11 {strides = array<i32>} : memref<128x128xf32, #tpu.memory_space<vmem>>, vector<128x128xf32>,
    return
  }
  func.func @transform_0(%arg0: i32) -> (i32, i32) {
    %c0_i32 = arith.constant 0 : i32
    %c0_i32_0 = arith.constant 0 : i32
    %c0_i32_1 = arith.constant 0 : i32
    return %c0_i32, %c0_i32_0 : i32, i32
  }
  func.func @transform_1(%arg0: i32) -> (i32, i32) {
    %c0_i32 = arith.constant 0 : i32
    %c0_i32_0 = arith.constant 0 : i32
    %c0_i32_1 = arith.constant 0 : i32
    return %c0_i32, %c0_i32_0 : i32, i32
  }
  func.func @transform_2(%arg0: i32) -> (i32, i32) {
    %c0_i32 = arith.constant 0 : i32
    %c0_i32_0 = arith.constant 0 : i32
    %c0_i32_1 = arith.constant 0 : i32
    return %c0_i32, %c0_i32_0 : i32, i32
  }
}

</mosaic_0001>

<bundles_post_ra>
// kernel: tpu_custom_call.1
= control target key start
LH: loop header
LB: loop body
LE: loop exit
PB: predicated region body
PF: predicated region fallthrough
CT: control target
= control target key end

     0   :  { %7 = vsyncpa [#allocation3], 0  ;;  %s906_s0 = inlined_call_operand.hbm [shape: bf16[128,128], index: 0, kind: input, shape index: {}]   ;;  %s907_s1 = inlined_call_operand.hbm [shape: f32[128,128], index: 1, kind: input, shape index: {}]   ;;  %s908_s2 = inlined_call_operand.hbm [shape: f32[128,128], index: 2, kind: output, shape index: {}]  }
   0x1   :  { %8 = vsyncpa [#allocation6], 0 }
   0x2   :  { %9 = vsyncpa [#allocation4], 0  ;;  %s744_s9 = smov 0  }
   0x3 LB: > { %s720_s10 = smov [#allocation2]   ;;  %s750_s12 = sadd.s32 4294967295, %s718_s9   ;;  %s718_s9 = sphi %s744_s9, %s15_s9  }
   0x4   : > { %s95_s11 = sshll.u32 %s720_s10, 4  ;;  %p485_p0 = scmp.ge.s32.totalorder %s718_s9, 1  ;;  %s96_s11 = int_to_ptr.vmem [resolvable:$true] %s95_s11 }
   0x5   : > { %p83_p1 = scmp.lt.s32.totalorder %s718_s9, 4  ;;  %p909_p4 = scmp.eq.s32.totalorder %s750_s12, 0 }
   0x6   : > { %s721_s14 = smov [#allocation5]   ;;  %s618_s19 = scalar_lea.hbm %s906_s0, 1024 }
   0x7   : > { %p755_p3 = pnand %p485_p0, %p83_p1  ;;  %s108_s15 = sshll.u32 %s721_s14, 4  ;;  %s768_s15 = int_to_ptr.vmem [resolvable:$true] %s108_s15 }
   0x8   : > { %p619_p7 = scmp.ne.s32.totalorder %s906_s0, %s618_s19  ;;  %p625_p11 = scmp.lt.u32.totalorder %s618_s19, %s906_s0 }
   0x9   : > { %s911_s13 = scalar_select %p755_p3, 1, 0 }
   0xa   : > { %p580_p5 = pneg %p755_p3 }
   0xc   : > { %p764_p6 = pnand %p909_p4, %p580_p5 }
   0xe   : > { %p620_p8 = pneg %p764_p6 }
  0x10   : > { %p621_p9 = pnand %p620_p8, %p619_p7 }
  0x12   : > { %p622_p10 = pneg %p621_p9 }
  0x14   : > { %p627_p12 = pnand %p625_p11, %p622_p10 }
  0x16   : > { %630 = shalt.err (!%p627_p12)
}
  0x17   : > { %s631_s24 = scalar_lea.vmem %s96_s11, 1024  ;;  %p639_p5 = scmp.lt.s32.totalorder %s96_s11, %s96_s11 }
  0x18   : > { %p632_p13 = scmp.ne.s32.totalorder %s96_s11, %s631_s24  ;;  %p640_p2 = scmp.lt.s32.totalorder %s631_s24, %s631_s24 }
  0x1a   : > { %p634_p0 = pnand %p632_p13, %p620_p8  ;;  %p641_p4 = por %p640_p2, %p639_p5 }
  0x1c   : > { %p635_p1 = pneg %p634_p0 }
  0x1e   : > { %p642_p3 = pnand %p641_p4, %p635_p1 }
  0x20   : > { %645 = shalt.err (!%p642_p3)
}
  0x21   : > { %s722_s25 = smov 64   ;;  %s723_s26 = smov 4  }
  0x22   : > { %583 = dma.hbm_to_vmem [thread:$0]  (!%p764_p6), %s906_s0, 1024, %s96_s11, [#allocation3], %s722_s25, %s722_s25, %s723_s26  }
  0x23   : > { %s646_s3 = scalar_lea.hbm %s907_s1, 2048 }
  0x24   : > { %p647_p7 = scmp.ne.s32.totalorder %s907_s1, %s646_s3  ;;  %p653_p4 = scmp.lt.u32.totalorder %s646_s3, %s907_s1 }
  0x26   : > { %p649_p2 = pnand %p647_p7, %p620_p8 }
  0x28   : > { %p650_p3 = pneg %p649_p2 }
  0x2a   : > { %p655_p9 = pnand %p653_p4, %p650_p3 }
  0x2c   : > { %658 = shalt.err (!%p655_p9)
}
  0x2d   : > { %s659_s8 = scalar_lea.vmem %s768_s15, 2048  ;;  %p667_p13 = scmp.lt.s32.totalorder %s768_s15, %s768_s15 }
  0x2e   : > { %p660_p10 = scmp.ne.s32.totalorder %s768_s15, %s659_s8  ;;  %p668_p0 = scmp.lt.s32.totalorder %s659_s8, %s659_s8 }
  0x30   : > { %p662_p11 = pnand %p660_p10, %p620_p8  ;;  %p669_p1 = por %p668_p0, %p667_p13 }
  0x32   : > { %p663_p12 = pneg %p662_p11 }
  0x34   : > { %p670_p5 = pnand %p669_p1, %p663_p12 }
  0x36   : > { %673 = shalt.err (!%p670_p5)
}
  0x37   : > { %s724_s10 = smov 128   ;;  %s725_s11 = smov 8  }
  0x38   : > { %586 = dma.hbm_to_vmem [thread:$0]  (!%p764_p6), %s907_s1, 2048, %s768_s15, [#allocation6], %s724_s10, %s724_s10, %s725_s11  }
  0x39   : > { %p913_p7 = scmp.ne.s32.totalorder %s911_s13, 0 }
  0x3a   : > { %p914_p8 = scmp.eq.s32.totalorder (!%p913_p7), %s750_s12, 0 }
  0x3b   : > { %124 = sbr.rel (%p913_p7) target bundleno = 359 (0x167), region = 28 }
  0x42   : > { %705 = dma.done.wait (%p914_p8), [#allocation3], 1024   ;;  %p915_p2 = pmov %p914_p8 }
  0x44   : > { %707 = vsyncadd (%p915_p2), [#allocation3], 4294966272  ;;  %p916_p3 = pmov %p915_p2 }
  0x45   : > { %p917_p4 = pmov %p915_p2 }
  0x46   : > { %709 = dma.done.wait (%p916_p3), [#allocation6], 2048  }
  0x47   : > { %711 = vsyncadd (%p917_p4), [#allocation6], 4294965248  ;;  %p918_p9 = scmp.ne.s32.totalorder %s750_s12, 0 }
  0x48   : > { %v145_v0 = vld [vmem:[#allocation5] sm:$0xff] (!%p918_p9)  ;;  %v146_v1 = vld [vmem:[#allocation5 + $0x8] sm:$0xff] (!%p918_p9)  ;;  %v147_v2 = vld [vmem:[#allocation5 + $0x10] sm:$0xff] (!%p918_p9) }
  0x49   : > { %144 = sbr.rel (%p918_p9) target bundleno = 81 (0x51), region = 40  ;;  %161 = vst [vmem:[#allocation7] sm:$0xff] (!%p918_p9), %v145_v0  ;;  %162 = vst [vmem:[#allocation7 + $0x8] sm:$0xff] (!%p918_p9), %v146_v1  ;;  %v148_v3 = vld [vmem:[#allocation5 + $0x18] sm:$0xff] (!%p918_p9)  ;;  %v149_v4 = vld [vmem:[#allocation5 + $0x20] sm:$0xff] (!%p918_p9) }
  0x4a   : > { %163 = vst [vmem:[#allocation7 + $0x10] sm:$0xff] (!%p918_p9), %v147_v2  ;;  %v150_v5 = vld [vmem:[#allocation5 + $0x28] sm:$0xff] (!%p918_p9)  ;;  %164 = vst [vmem:[#allocation7 + $0x18] sm:$0xff] (!%p918_p9), %v148_v3  ;;  %v151_v6 = vld [vmem:[#allocation5 + $0x30] sm:$0xff] (!%p918_p9) }
  0x4b   : > { %165 = vst [vmem:[#allocation7 + $0x20] sm:$0xff] (!%p918_p9), %v149_v4  ;;  %166 = vst [vmem:[#allocation7 + $0x28] sm:$0xff] (!%p918_p9), %v150_v5  ;;  %v152_v7 = vld [vmem:[#allocation5 + $0x38] sm:$0xff] (!%p918_p9)  ;;  %v153_v8 = vld [vmem:[#allocation5 + $0x40] sm:$0xff] (!%p918_p9) }
  0x4c   : > { %167 = vst [vmem:[#allocation7 + $0x30] sm:$0xff] (!%p918_p9), %v151_v6  ;;  %168 = vst [vmem:[#allocation7 + $0x38] sm:$0xff] (!%p918_p9), %v152_v7  ;;  %v154_v9 = vld [vmem:[#allocation5 + $0x48] sm:$0xff] (!%p918_p9)  ;;  %v155_v10 = vld [vmem:[#allocation5 + $0x50] sm:$0xff] (!%p918_p9) }
  0x4d   : > { %169 = vst [vmem:[#allocation7 + $0x40] sm:$0xff] (!%p918_p9), %v153_v8  ;;  %v156_v11 = vld [vmem:[#allocation5 + $0x58] sm:$0xff] (!%p918_p9)  ;;  %170 = vst [vmem:[#allocation7 + $0x48] sm:$0xff] (!%p918_p9), %v154_v9  ;;  %v157_v12 = vld [vmem:[#allocation5 + $0x60] sm:$0xff] (!%p918_p9) }
  0x4e   : > { %171 = vst [vmem:[#allocation7 + $0x50] sm:$0xff] (!%p918_p9), %v155_v10  ;;  %172 = vst [vmem:[#allocation7 + $0x58] sm:$0xff] (!%p918_p9), %v156_v11  ;;  %v158_v13 = vld [vmem:[#allocation5 + $0x68] sm:$0xff] (!%p918_p9)  ;;  %v159_v14 = vld [vmem:[#allocation5 + $0x70] sm:$0xff] (!%p918_p9) }
  0x4f   : > { %173 = vst [vmem:[#allocation7 + $0x60] sm:$0xff] (!%p918_p9), %v157_v12  ;;  %174 = vst [vmem:[#allocation7 + $0x68] sm:$0xff] (!%p918_p9), %v158_v13  ;;  %v160_v15 = vld [vmem:[#allocation5 + $0x78] sm:$0xff] (!%p918_p9) }
  0x50   : > { %175 = vst [vmem:[#allocation7 + $0x70] sm:$0xff] %v159_v14  ;;  %176 = vst [vmem:[#allocation7 + $0x78] sm:$0xff] %v160_v15 }
  0x51 PF: > { %v829_v16 = vld [vmem:[#allocation7] sm:$0xff]  ;;  %v831_v17 = vld [vmem:[#allocation7 + $0x8] sm:$0xff]  ;;  %v614_v44 = vld [vmem:[#allocation2 + $0x10] sm:$0xff]   ;;  %s726_s13 = smov [#allocation7]   ;;  %p591_p6 = scmp.eq.s32.totalorder %s750_s12, 2 }
  0x52   : > { %v833_v18 = vld [vmem:[#allocation7 + $0x10] sm:$0xff]  ;;  %v209_v19 = vpack.c.bf16 %v831_v17, %v829_v16  ;;  %v837_v20 = vld [vmem:[#allocation7 + $0x18] sm:$0xff]  ;;  %v610_v27 = vld [vmem:[#allocation2] sm:$0xff]   ;;  %v378_v50 = vmul.f32 0.1, %v829_v16  ;;  %s432_s15 = sshll.u32 %s726_s13, 4  ;;  %s874_s15 = int_to_ptr.vmem [resolvable:$true] %s432_s15 }
  0x53   : > { %v210_v21 = vpack.c.bf16 %v837_v20, %v833_v18  ;;  %v841_v22 = vld [vmem:[#allocation7 + $0x20] sm:$0xff]  ;;  %v843_v23 = vld [vmem:[#allocation7 + $0x28] sm:$0xff]  ;;  %536 = vmatprep.mubr.bf16.mxu0 %v610_v27  ;;  %v615_v45 = vld [vmem:[#allocation2 + $0x30] sm:$0xff]   ;;  %v380_v48 = vmul.f32 0.1, %v833_v18  ;;  %s674_s16 = scalar_lea.vmem %s874_s15, 2048  ;;  %p681_p13 = scmp.lt.s32.totalorder %s874_s15, %s874_s15 }
  0x54   : > { %520 = vmatprep.subr.bf16.mxu0 %v209_v19  ;;  %552 = vmatprep.subr.bf16.mxu1 %v209_v19  ;;  %v845_v24 = vld [vmem:[#allocation7 + $0x30] sm:$0xff]  ;;  %v211_v25 = vpack.c.bf16 %v843_v23, %v841_v22  ;;  %v849_v26 = vld [vmem:[#allocation7 + $0x38] sm:$0xff]  ;;  %v611_v28 = vld [vmem:[#allocation2 + $0x20] sm:$0xff]   ;;  %v381_v52 = vmul.f32 0.1, %v837_v20  ;;  %p675_p10 = scmp.ne.s32.totalorder %s874_s15, %s674_s16  ;;  %p682_p0 = scmp.lt.s32.totalorder %s674_s16, %s674_s16 }
  0x55   : > { %521 = vmatpush3.bf16.msra.mxu0 %v209_v19  ;;  %560 = vmatpush3.bf16.msra.mxu1 %v209_v19  ;;  %v212_v29 = vpack.c.bf16 %v849_v26, %v845_v24  ;;  %v185_v30 = vld [vmem:[#allocation7 + $0x40] sm:$0xff]  ;;  %v186_v31 = vld [vmem:[#allocation7 + $0x48] sm:$0xff]  ;;  %v616_v46 = vld [vmem:[#allocation2 + $0x18] sm:$0xff]   ;;  %v379_v56 = vmul.f32 0.1, %v831_v17 }
  0x56   : > { %522 = vmatprep.subr.bf16.mxu0 %v210_v21  ;;  %553 = vmatprep.subr.bf16.mxu1 %v210_v21  ;;  %v213_v32 = vpack.c.bf16 %v186_v31, %v185_v30  ;;  %v187_v33 = vld [vmem:[#allocation7 + $0x50] sm:$0xff]  ;;  %v188_v34 = vld [vmem:[#allocation7 + $0x58] sm:$0xff]  ;;  %v612_v42 = vld [vmem:[#allocation2 + $0x8] sm:$0xff]   ;;  %v386_v51 = vmul.f32 0.1, %v185_v30  ;;  %p676_p11 = pnand %p675_p10, %p591_p6  ;;  %p683_p1 = por %p682_p0, %p681_p13 }
  0x57   : > { %544 = vmatprep.mubr.bf16.mxu1 %v611_v28  ;;  %v214_v35 = vpack.c.bf16 %v188_v34, %v187_v33  ;;  %v853_v36 = vld [vmem:[#allocation7 + $0x60] sm:$0xff]  ;;  %v855_v37 = vld [vmem:[#allocation7 + $0x68] sm:$0xff]  ;;  %v191_v39 = vld [vmem:[#allocation7 + $0x70] sm:$0xff]  ;;  %v388_v49 = vmul.f32 0.1, %v187_v33 }
  0x58   : > { %v215_v38 = vpack.c.bf16 %v855_v37, %v853_v36  ;;  %v859_v40 = vld [vmem:[#allocation7 + $0x78] sm:$0xff]  ;;  %v613_v43 = vld [vmem:[#allocation2 + $0x28] sm:$0xff]   ;;  %v389_v53 = vmul.f32 0.1, %v188_v34  ;;  %v387_v57 = vmul.f32 0.1, %v186_v31  ;;  %p677_p12 = pneg %p676_p11 }
  0x59   : > { %523 = vmatpush3.bf16.msra.mxu0 %v210_v21  ;;  %561 = vmatpush3.bf16.msra.mxu1 %v210_v21  ;;  %v216_v41 = vpack.c.bf16 %v859_v40, %v191_v39  ;;  %v617_v47 = vld [vmem:[#allocation2 + $0x38] sm:$0xff]   ;;  %v384_v14 = vmul.f32 0.1, %v845_v24  ;;  %v392_v15 = vmul.f32 0.1, %v191_v39 }
  0x5a   : > { %524 = vmatprep.subr.bf16.mxu0 %v211_v25  ;;  %554 = vmatprep.subr.bf16.mxu1 %v211_v25  ;;  %v382_v18 = vmul.f32 0.1, %v841_v22  ;;  %v390_v19 = vmul.f32 0.1, %v853_v36  ;;  %v385_v20 = vmul.f32 0.1, %v849_v26  ;;  %p684_p5 = pnand %p683_p1, %p677_p12 }
  0x5b   : > { %v393_v21 = vmul.f32 0.1, %v859_v40  ;;  %v391_v28 = vmul.f32 0.1, %v855_v37 }
  0x5d   : > { %525 = vmatpush3.bf16.msra.mxu0 %v211_v25  ;;  %562 = vmatpush3.bf16.msra.mxu1 %v211_v25  ;;  %v383_v25 = vmul.f32 0.1, %v843_v23 }
  0x5e   : > { %526 = vmatprep.subr.bf16.mxu0 %v212_v29  ;;  %555 = vmatprep.subr.bf16.mxu1 %v212_v29 }
  0x61   : > { %527 = vmatpush3.bf16.msra.mxu0 %v212_v29  ;;  %563 = vmatpush3.bf16.msra.mxu1 %v212_v29 }
  0x62   : > { %528 = vmatprep.subr.bf16.mxu0 %v213_v32  ;;  %556 = vmatprep.subr.bf16.mxu1 %v213_v32 }
  0x65   : > { %529 = vmatpush3.bf16.msra.mxu0 %v213_v32  ;;  %564 = vmatpush3.bf16.msra.mxu1 %v213_v32 }
  0x66   : > { %530 = vmatprep.subr.bf16.mxu0 %v214_v35  ;;  %557 = vmatprep.subr.bf16.mxu1 %v214_v35 }
  0x69   : > { %531 = vmatpush3.bf16.msra.mxu0 %v214_v35  ;;  %565 = vmatpush3.bf16.msra.mxu1 %v214_v35 }
  0x6a   : > { %532 = vmatprep.subr.bf16.mxu0 %v215_v38  ;;  %558 = vmatprep.subr.bf16.mxu1 %v215_v38 }
  0x6d   : > { %533 = vmatpush3.bf16.msra.mxu0 %v215_v38  ;;  %566 = vmatpush3.bf16.msra.mxu1 %v215_v38 }
  0x6e   : > { %534 = vmatprep.subr.bf16.mxu0 %v216_v41  ;;  %559 = vmatprep.subr.bf16.mxu1 %v216_v41 }
  0x71   : > { %535 = vmatpush3.bf16.msra.mxu0 %v216_v41  ;;  %567 = vmatpush3.bf16.msra.mxu1 %v216_v41 }
  0x74   : > { %537 = vmatmul.mubr.bf16.vlgmr.msra.gmra.mrb[0].mxu0 %v612_v42  ;;  %545 = vmatmul.mubr.bf16.vlgmr.msra.gmra.mrb[0].mxu1 %v613_v43 }
  0x75   : > { %540 = vmatprep.mubr.bf16.mxu0 %v614_v44  ;;  %548 = vmatprep.mubr.bf16.mxu1 %v615_v45 }
  0x7c   : > { %541 = vmatmul.mubr.bf16.gmra.mrb[4].mxu0 %v616_v46  ;;  %549 = vmatmul.mubr.bf16.gmra.mrb[4].mxu1 %v617_v47 }
 0x147   : > { %v538_v54 = vpop.f32.mrb[0].mxu0  ;;  %v546_v55 = vpop.f32.mrb[0].mxu1 }
 0x148   : > { %v364_v58 = vmul.f32 0.9, %v538_v54  ;;  %v372_v59 = vmul.f32 0.9, %v546_v55  ;;  %v299_v60 = vpop.f32.mrb[1].mxu0  ;;  %v331_v61 = vpop.f32.mrb[1].mxu1 }
 0x149   : > { %v362_v62 = vmul.f32 0.9, %v299_v60  ;;  %v370_v63 = vmul.f32 0.9, %v331_v61  ;;  %v539_v0 = vpop.f32.mrb[2].mxu0  ;;  %v547_v1 = vpop.f32.mrb[2].mxu1 }
 0x14a   : > { %v396_v2 = vadd.f32 %v380_v48, %v364_v58  ;;  %v404_v3 = vadd.f32 %v388_v49, %v372_v59  ;;  %v365_v4 = vmul.f32 0.9, %v539_v0  ;;  %v373_v5 = vmul.f32 0.9, %v547_v1  ;;  %v302_v6 = vpop.f32.mrb[3].mxu0  ;;  %v334_v7 = vpop.f32.mrb[3].mxu1 }
 0x14b   : > { %v394_v8 = vadd.f32 %v378_v50, %v362_v62  ;;  %v402_v9 = vadd.f32 %v386_v51, %v370_v63  ;;  %v363_v10 = vmul.f32 0.9, %v302_v6  ;;  %v371_v11 = vmul.f32 0.9, %v334_v7 }
 0x14c   : > { %412 = vst [vmem:[#allocation7 + $0x10] sm:$0xff] %v396_v2  ;;  %420 = vst [vmem:[#allocation7 + $0x50] sm:$0xff] %v404_v3  ;;  %v397_v12 = vadd.f32 %v381_v52, %v365_v4  ;;  %v405_v13 = vadd.f32 %v389_v53, %v373_v5 }
 0x14d   : > { %410 = vst [vmem:[#allocation7] sm:$0xff] %v394_v8  ;;  %418 = vst [vmem:[#allocation7 + $0x40] sm:$0xff] %v402_v9  ;;  %v395_v16 = vadd.f32 %v379_v56, %v363_v10  ;;  %v403_v17 = vadd.f32 %v387_v57, %v371_v11 }
 0x14e   : > { %413 = vst [vmem:[#allocation7 + $0x18] sm:$0xff] %v397_v12  ;;  %421 = vst [vmem:[#allocation7 + $0x58] sm:$0xff] %v405_v13 }
 0x14f   : > { %411 = vst [vmem:[#allocation7 + $0x8] sm:$0xff] %v395_v16  ;;  %419 = vst [vmem:[#allocation7 + $0x48] sm:$0xff] %v403_v17  ;;  %v542_v24 = vpop.f32.mrb[4].mxu0  ;;  %v550_v27 = vpop.f32.mrb[4].mxu1 }
 0x150   : > { %v368_v29 = vmul.f32 0.9, %v542_v24  ;;  %v376_v22 = vmul.f32 0.9, %v550_v27  ;;  %v315_v30 = vpop.f32.mrb[5].mxu0  ;;  %v347_v31 = vpop.f32.mrb[5].mxu1 }
 0x151   : > { %v366_v32 = vmul.f32 0.9, %v315_v30  ;;  %v374_v33 = vmul.f32 0.9, %v347_v31  ;;  %v543_v34 = vpop.f32.mrb[6].mxu0  ;;  %v551_v26 = vpop.f32.mrb[6].mxu1 }
 0x152   : > { %v400_v35 = vadd.f32 %v384_v14, %v368_v29  ;;  %v408_v36 = vadd.f32 %v392_v15, %v376_v22  ;;  %v369_v23 = vmul.f32 0.9, %v543_v34  ;;  %v377_v38 = vmul.f32 0.9, %v551_v26  ;;  %v318_v39 = vpop.f32.mrb[7].mxu0  ;;  %v350_v40 = vpop.f32.mrb[7].mxu1 }
 0x153   : > { %v398_v41 = vadd.f32 %v382_v18, %v366_v32  ;;  %v406_v42 = vadd.f32 %v390_v19, %v374_v33  ;;  %v367_v37 = vmul.f32 0.9, %v318_v39  ;;  %v375_v43 = vmul.f32 0.9, %v350_v40 }
 0x154   : > { %416 = vst [vmem:[#allocation7 + $0x30] sm:$0xff] %v400_v35  ;;  %424 = vst [vmem:[#allocation7 + $0x70] sm:$0xff] %v408_v36  ;;  %v401_v44 = vadd.f32 %v385_v20, %v369_v23  ;;  %v409_v45 = vadd.f32 %v393_v21, %v377_v38 }
 0x155   : > { %414 = vst [vmem:[#allocation7 + $0x20] sm:$0xff] %v398_v41  ;;  %422 = vst [vmem:[#allocation7 + $0x60] sm:$0xff] %v406_v42  ;;  %v399_v46 = vadd.f32 %v383_v25, %v367_v37  ;;  %v407_v47 = vadd.f32 %v391_v28, %v375_v43 }
 0x156   : > { %417 = vst [vmem:[#allocation7 + $0x38] sm:$0xff] %v401_v44  ;;  %425 = vst [vmem:[#allocation7 + $0x78] sm:$0xff] %v409_v45 }
 0x157   : > { %415 = vst [vmem:[#allocation7 + $0x28] sm:$0xff] %v399_v46  ;;  %423 = vst [vmem:[#allocation7 + $0x68] sm:$0xff] %v407_v47 }
 0x158   : > { %687 = shalt.err (!%p684_p5)
}
 0x159   : > { %s688_s20 = scalar_lea.hbm %s908_s2, 2048 }
 0x15a   : > { %p689_p7 = scmp.ne.s32.totalorder %s908_s2, %s688_s20  ;;  %p694_p3 = scmp.lt.u32.totalorder %s688_s20, %s908_s2 }
 0x15c   : > { %p690_p8 = pnand %p689_p7, %p591_p6 }
 0x15e   : > { %p691_p2 = pneg %p690_p8 }
 0x160   : > { %p696_p4 = pnand %p694_p3, %p691_p2 }
 0x162   : > { %699 = shalt.err (!%p696_p4)
}
 0x163   : > { %s727_s25 = smov 128   ;;  %s728_s26 = smov 8  }
 0x164   : > { %577 = dma.vmem_to_hbm [thread:$0]  (%p591_p6), %s874_s15, 2048, %s908_s2, [#allocation4], %s727_s25, %s727_s25, %s728_s26  }
 0x165   : > { %713 = dma.done.wait (%p591_p6), [#allocation4], 2048  }
 0x166   : > { %715 = vsyncadd (%p591_p6), [#allocation4], 4294965248 }
 0x167 PF: > { %s15_s9 = sadd.s32 1, %s718_s9  }
 0x168   : > { %p12_p9 = scmp.ge.s32.totalorder %s15_s9, 5  }
 0x16a   :  { %14 = sbr.rel (!%p12_p9) target bundleno = 3 (0x3), region = 65 }
 0x171   :  { %448 = vsyncpa [#allocation3], 1 }
 0x172   :  { %450 = vsyncpa [#allocation3 + $0x1], 1 }
 0x173   :  { %451 = vsyncpa [#allocation6], 1 }
 0x174   :  { %452 = vsyncpa [#allocation4], 1 }
 0x175   :  { %454 = vsyncpa [#allocation4 + $0x1], 1 }

</bundles_post_ra>
